<compile_context>
chip_gen: v7x
topology: tpu7x:2x2x1
jax: 0.10.0
libtpu: 0.0.40
codegen_flags: <defaults>
</compile_context>

<pallas_src>
import functools

import jax
import jax.numpy as jnp
import numpy as np
from jax.experimental import pallas as pl
from jax.experimental.pallas import tpu as pltpu


def _round_up(x, m):
    return ((x + m - 1) // m) * m


def actor_critic_kernel(x_ref, p_ref, out_ref, *, sd_pad, H, A):
    H2 = 2 * H
    r_wh = sd_pad            # fused head-1 weight  [H, 2H]
    r_w2 = sd_pad + H        # fused head-2 weight  [2H, H] (block diagonal)
    r_bh = r_w2 + H2         # fused head-1 bias row
    r_b2 = r_bh + 8          # fused head-2 bias row

    x = x_ref[...]                                   # [B, sd_pad] (1-augmented)
    w1 = p_ref[0:sd_pad, 0:H]                        # W1 with b1 folded in
    wh = p_ref[r_wh:r_wh + H, 0:H2]
    w2 = p_ref[r_w2:r_w2 + H2, 0:H]
    bh = p_ref[r_bh:r_bh + 1, 0:H2]                  # [1, 2H]
    b2 = p_ref[r_b2:r_b2 + 1, 0:H]                   # [1, H]

    # shared trunk (bias folded into the matmul via the ones column in x)
    h = jnp.tanh(jnp.dot(x, w1, preferred_element_type=jnp.float32))
    # fused actor/critic first layers: one dot, one bias add, one tanh
    hc = jnp.tanh(jnp.dot(h, wh, preferred_element_type=jnp.float32) + bh)
    # fused second layers (block-diagonal): mu lanes [0:A], val lane A
    z = jnp.dot(hc, w2, preferred_element_type=jnp.float32) + b2
    lane = jax.lax.broadcasted_iota(jnp.int32, z.shape, 1)
    out_ref[...] = jnp.where(lane < A, jnp.tanh(z), z)


def init_params(key, state_dim, action_dim, hidden_size=128):
    ks = jax.random.split(key, 5)

    def lin(k, fan_in, fan_out):
        bound = 1.0 / np.sqrt(fan_in)
        kw, kb = jax.random.split(k)
        w = jax.random.uniform(kw, (fan_in, fan_out), jnp.float32, -bound, bound)
        b = jax.random.uniform(kb, (1, fan_out), jnp.float32, -bound, bound)
        return w, b

    w1, b1 = lin(ks[0], state_dim, hidden_size)
    wa1, ba1 = lin(ks[1], hidden_size, hidden_size)
    wa2, ba2 = lin(ks[2], hidden_size, action_dim)
    wc1, bc1 = lin(ks[3], hidden_size, hidden_size)
    wc2, bc2 = lin(ks[4], hidden_size, 1)
    log_std = jnp.full((1, action_dim), -1.0, dtype=jnp.float32)
    return dict(w1=w1, b1=b1, wa1=wa1, ba1=ba1, wa2=wa2, ba2=ba2,
                wc1=wc1, bc1=bc1, wc2=wc2, bc2=bc2, log_std=log_std)


def pack_params(p, state_dim, action_dim, hidden):
    """Pack all weights/biases into one lane-aligned f32 slab (done once)."""
    H, A = hidden, action_dim
    H2 = 2 * H
    sd_pad = _round_up(state_dim + 1, 8)          # +1 for the folded-bias column
    n_rows = sd_pad + H + H2 + 16
    slab = np.zeros((n_rows, H2), np.float32)

    # shared: W1 [state_dim, H] with b1 folded into row `state_dim`
    slab[0:state_dim, 0:H] = np.asarray(p["w1"])
    slab[state_dim, 0:H] = np.asarray(p["b1"]).reshape(-1)

    # fused head-1 weight [H, 2H] = [wa1 | wc1]
    r_wh = sd_pad
    slab[r_wh:r_wh + H, 0:H] = np.asarray(p["wa1"])
    slab[r_wh:r_wh + H, H:H2] = np.asarray(p["wc1"])

    # fused head-2 weight [2H, H], block diagonal (exact zeros off-block)
    r_w2 = sd_pad + H
    slab[r_w2:r_w2 + H, 0:A] = np.asarray(p["wa2"])
    slab[r_w2 + H:r_w2 + H2, A:A + 1] = np.asarray(p["wc2"])

    # bias rows (each in its own 8-row-aligned block)
    r_bh = r_w2 + H2
    slab[r_bh, 0:H] = np.asarray(p["ba1"]).reshape(-1)
    slab[r_bh, H:H2] = np.asarray(p["bc1"]).reshape(-1)
    r_b2 = r_bh + 8
    slab[r_b2, 0:A] = np.asarray(p["ba2"]).reshape(-1)
    slab[r_b2, A:A + 1] = np.asarray(p["bc2"]).reshape(-1)

    return jnp.asarray(slab), sd_pad


@functools.partial(jax.jit,
                   static_argnames=("state_dim", "action_dim", "hidden", "sd_pad"))
def actor_critic_forward(x, slab, exp_log_std, *, state_dim, action_dim, hidden,
                         sd_pad):
    B = x.shape[0]
    H, A = hidden, action_dim
    # pad state features and append the constant-1 column (folds b1 into W1)
    x_aug = jnp.concatenate(
        [x,
         jnp.ones((B, 1), jnp.float32),
         jnp.zeros((B, sd_pad - state_dim - 1), jnp.float32)],
        axis=1)

    vmem = pl.BlockSpec(memory_space=pltpu.MemorySpace.VMEM)
    out = pl.pallas_call(
        functools.partial(actor_critic_kernel, sd_pad=sd_pad, H=H, A=A),
        out_shape=jax.ShapeDtypeStruct((B, H), jnp.float32),
        in_specs=[vmem, vmem],
        out_specs=vmem,
        # TODO(synk): if B grows to hundreds+, add a batch grid with
        # dimension_semantics=("parallel",) so v7x can use both TensorCores.
    )(x_aug, slab)

    mu = out[:, :A]
    val = out[:, A:A + 1]
    std = jnp.broadcast_to(exp_log_std, (B, A))   # constant, computed outside kernel
    return (mu, std), val


def reference_forward(x, p):
    h = jnp.tanh(x @ p["w1"] + p["b1"])
    a1 = jnp.tanh(h @ p["wa1"] + p["ba1"])
    mu = jnp.tanh(a1 @ p["wa2"] + p["ba2"])
    std = jnp.broadcast_to(jnp.exp(p["log_std"]), mu.shape)
    c1 = jnp.tanh(h @ p["wc1"] + p["bc1"])
    val = c1 @ p["wc2"] + p["bc2"]
    return (mu, std), val


if __name__ == "__main__":
    # InvertedDoublePendulum-v4: state_dim=11, action_dim=1
    B, STATE_DIM, ACTION_DIM, HIDDEN = 8, 11, 1, 128

    key = jax.random.PRNGKey(0)
    kx, kp = jax.random.split(key)
    x = jax.random.normal(kx, (B, STATE_DIM), dtype=jnp.float32)
    params = init_params(kp, STATE_DIM, ACTION_DIM, HIDDEN)

    slab, sd_pad = pack_params(params, STATE_DIM, ACTION_DIM, HIDDEN)
    exp_log_std = jnp.exp(params["log_std"])

    (mu, std), val = actor_critic_forward(
        x, slab, exp_log_std,
        state_dim=STATE_DIM, action_dim=ACTION_DIM, hidden=HIDDEN, sd_pad=sd_pad)
    jax.block_until_ready((mu, std, val))

    (mu_r, std_r), val_r = reference_forward(x, params)
    assert mu.shape == (B, ACTION_DIM) and std.shape == (B, ACTION_DIM)
    assert val.shape == (B, 1)
    np.testing.assert_allclose(np.asarray(mu), np.asarray(mu_r), atol=1e-5, rtol=1e-5)
    np.testing.assert_allclose(np.asarray(std), np.asarray(std_r), atol=1e-5, rtol=1e-5)
    np.testing.assert_allclose(np.asarray(val), np.asarray(val_r), atol=1e-5, rtol=1e-5)

    print("KERNEL_OK")
</pallas_src>

<mosaic_0001>
module attributes {stable_mosaic.version = 11 : i64} {
  func.func @actor_critic_kernel(%arg0: memref<8x16xf32, #tpu.memory_space<vmem>>, %arg1: memref<416x256xf32, #tpu.memory_space<vmem>>, %arg2: memref<8x128xf32, #tpu.memory_space<vmem>>) attributes {dimension_semantics = [], scalar_prefetch = 0 : i64, scratch_operands = 0 : i64, tpu.core_type = #tpu.core_type<tc>} {
    %c0 = arith.constant 0 : index
    %c0_0 = arith.constant 0 : index
    %0 = vector.load %arg0[%c0, %c0_0] : memref<8x16xf32, #tpu.memory_space<vmem>>, vector<8x16xf32>
    %c0_1 = arith.constant 0 : index
    %c0_2 = arith.constant 0 : index
    %1 = vector.load %arg1[%c0_1, %c0_2] : memref<416x256xf32, #tpu.memory_space<vmem>>, vector<16x128xf32>
    %c16 = arith.constant 16 : index
    %c0_3 = arith.constant 0 : index
    %2 = vector.load %arg1[%c16, %c0_3] : memref<416x256xf32, #tpu.memory_space<vmem>>, vector<128x256xf32>
    %c144 = arith.constant 144 : index
    %c0_4 = arith.constant 0 : index
    %3 = vector.load %arg1[%c144, %c0_4] : memref<416x256xf32, #tpu.memory_space<vmem>>, vector<256x128xf32>
    %c400 = arith.constant 400 : index
    %c0_5 = arith.constant 0 : index
    %4 = vector.load %arg1[%c400, %c0_5] : memref<416x256xf32, #tpu.memory_space<vmem>>, vector<1x256xf32>
    %c408 = arith.constant 408 : index
    %c0_6 = arith.constant 0 : index
    %5 = vector.load %arg1[%c408, %c0_6] : memref<416x256xf32, #tpu.memory_space<vmem>>, vector<1x128xf32>
    %cst = arith.constant dense<0.000000e+00> : vector<8x128xf32>
    %6 = tpu.matmul %0, %1, %cst {dimension_numbers = #tpu.dot_dimension_numbers<[1], [0], [0], [1], [0, 0, 1, 1], [], []>} : vector<8x16xf32>, vector<16x128xf32>, vector<8x128xf32> -> vector<8x128xf32>
    %7 = math.tanh %6 : vector<8x128xf32>
    %cst_7 = arith.constant dense<0.000000e+00> : vector<8x256xf32>
    %8 = tpu.matmul %7, %2, %cst_7 {dimension_numbers = #tpu.dot_dimension_numbers<[1], [0], [0], [1], [0, 0, 1, 1], [], []>} : vector<8x128xf32>, vector<128x256xf32>, vector<8x256xf32> -> vector<8x256xf32>
    %9 = vector.broadcast %4 : vector<1x256xf32> to vector<8x256xf32>
    %10 = arith.addf %8, %9 : vector<8x256xf32>
    %11 = math.tanh %10 : vector<8x256xf32>
    %cst_8 = arith.constant dense<0.000000e+00> : vector<8x128xf32>
    %12 = tpu.matmul %11, %3, %cst_8 {dimension_numbers = #tpu.dot_dimension_numbers<[1], [0], [0], [1], [0, 0, 1, 1], [], []>} : vector<8x256xf32>, vector<256x128xf32>, vector<8x128xf32> -> vector<8x128xf32>
    %13 = vector.broadcast %5 : vector<1x128xf32> to vector<8x128xf32>
    %14 = arith.addf %12, %13 : vector<8x128xf32>
    %15 = tpu.iota {dimensions = array<i32: 1>} : vector<8x128xi32>
    %c1_i32 = arith.constant 1 : i32
    %16 = vector.broadcast %c1_i32 : i32 to vector<8x128xi32>
    %17 = arith.cmpi slt, %15, %16 : vector<8x128xi32>
    %18 = math.tanh %14 : vector<8x128xf32>
    %19 = arith.select %17, %18, %14 : vector<8x128xi1>, vector<8x128xf32>
    %c0_9 = arith.constant 0 : index
    %c0_10 = arith.constant 0 : index
    %20 = vector.load %arg2[%c0_9, %c0_10] : memref<8x128xf32, #tpu.memory_space<vmem>>, vector<8x128xf32>
    tpu.vector_store %arg2[%c0_9, %c0_10], %19 {strides = array<i32>} : memref<8x128xf32, #tpu.memory_space<vmem>>, vector<8x128xf32>,
    return
  }
}

</mosaic_0001>

<bundles_post_ra>
// kernel: actor_critic_forward.1
= control target key start
LH: loop header
LB: loop body
LE: loop exit
PB: predicated region body
PF: predicated region fallthrough
CT: control target
= control target key end

     0   :  { %7 = vsyncpa [#allocation3], 0  ;;  %s486_s9 = smov [#allocation2]   ;;  %s525_s0 = inlined_call_operand.vmem [shape: f32[8,16], index: 0, kind: input, shape index: {}]   ;;  %s526_s1 = inlined_call_operand.hbm [shape: f32[416,256], index: 1, kind: input, shape index: {}]   ;;  %s527_s2 = inlined_call_operand.vmem [shape: f32[8,128], index: 2, kind: output, shape index: {}]  }
   0x1   :  { %s15_s10 = sshll.u32 %s486_s9, 4  ;;  %s462_s13 = scalar_lea.hbm %s526_s1, 13312  ;;  %s16_s10 = int_to_ptr.vmem [resolvable:$true] %s15_s10 }
   0x2   :  { %p463_p0 = scmp.ne.s32.totalorder %s526_s1, %s462_s13  ;;  %p466_p1 = scmp.lt.u32.totalorder %s462_s13, %s526_s1 }
   0x4   :  { %p468_p2 = pnand %p466_p1, %p463_p0 }
   0x6   :  { %471 = shalt.err (!%p468_p2)
}
   0x7   :  { %s472_s18 = scalar_lea.vmem %s16_s10, 13312  ;;  %p477_p4 = scmp.lt.s32.totalorder %s16_s10, %s16_s10 }
   0x8   :  { %p473_p3 = scmp.ne.s32.totalorder %s16_s10, %s472_s18  ;;  %p478_p5 = scmp.lt.s32.totalorder %s472_s18, %s472_s18 }
   0xa   :  { %p479_p6 = por %p478_p5, %p477_p4 }
   0xc   :  { %p480_p7 = pnand %p479_p6, %p473_p3 }
   0xe   :  { %483 = shalt.err (!%p480_p7)
}
   0xf   :  { %s487_s19 = smov 256   ;;  %s488_s20 = smov 16  }
  0x10   :  { %21 = dma.hbm_to_vmem [thread:$0]  %s526_s1, 13312, %s16_s10, [#allocation3], %s487_s19, %s487_s19, %s488_s20  }
  0x11   :  { %484 = dma.done.wait [#allocation3], 13312  }
  0x12   :  { %485 = vsyncadd [#allocation3], 4294953984  ;;  %v489_v0 = vmov 0.0|0.0   ;;  %vm490_vm0 = vmmov 0   ;;  %v491_v1 = vmov 0.0   ;;  %v26_v2 = vld [vmem:[#allocation2] sm:$0xff] }
  0x13   :  { %381 = vmatprep.subr.bf16.mxu0 %v489_v0  ;;  %378 = vmatprep.mubr.msk.f32.mxu0 %vm490_vm0, %v491_v1  ;;  %v27_v3 = vld [vmem:[#allocation2 + $0x10] sm:$0xff]  ;;  %v25_v5 = vld [vmem:[%s525_s0] sm:$0xff]  ;;  %v29_v6 = vld [vmem:[#allocation2 + $0x28] sm:$0xff]  ;;  %vm95_vm1 = vcmask 130048  }
  0x14   :  { %245 = vmatprep.mubr.f32.mxu1 %v491_v1  ;;  %v382_v4 = vpack.c.bf16 %v27_v3, %v26_v2  ;;  %v31_v7 = vld [vmem:[#allocation2 + $0x38] sm:$0xff]  ;;  %v28_v8 = vld [vmem:[#allocation2 + $0x20] sm:$0xff]  ;;  %v30_v10 = vld [vmem:[#allocation2 + $0x30] sm:$0xff] }
  0x15   :  { %v384_v9 = vpack.c.bf16 %v31_v7, %v29_v6  ;;  %v33_v11 = vld [vmem:[#allocation2 + $0x48] sm:$0xff]  ;;  %v35_v12 = vld [vmem:[#allocation2 + $0x58] sm:$0xff]  ;;  %v386_v13 = vpack.c.bf16 %v30_v10, %v28_v8  ;;  %v32_v15 = vld [vmem:[#allocation2 + $0x40] sm:$0xff] }
  0x16   :  { %383 = vmatpush3.bf16.msra.mxu0 %v382_v4  ;;  %v388_v14 = vpack.c.bf16 %v35_v12, %v33_v11  ;;  %v34_v16 = vld [vmem:[#allocation2 + $0x50] sm:$0xff]  ;;  %v37_v17 = vld [vmem:[#allocation2 + $0x68] sm:$0xff]  ;;  %v39_v18 = vld [vmem:[#allocation2 + $0x78] sm:$0xff] }
  0x17   :  { %385 = vmatprep.subr.bf16.mxu1 %v384_v9  ;;  %v390_v19 = vpack.c.bf16 %v34_v16, %v32_v15  ;;  %v392_v20 = vpack.c.bf16 %v39_v18, %v37_v17  ;;  %v36_v21 = vld [vmem:[#allocation2 + $0x60] sm:$0xff]  ;;  %v38_v22 = vld [vmem:[#allocation2 + $0x70] sm:$0xff]  ;;  %v41_v23 = vld [vmem:[#allocation2 + $0x88] sm:$0xff] }
  0x18   :  { %387 = vmatpush1.bf16.msra.mxu1 %v386_v13  ;;  %v43_v24 = vld [vmem:[#allocation2 + $0x98] sm:$0xff]  ;;  %v394_v25 = vpack.c.bf16 %v38_v22, %v36_v21  ;;  %v40_v27 = vld [vmem:[#allocation2 + $0x80] sm:$0xff]  ;;  %v42_v28 = vld [vmem:[#allocation2 + $0x90] sm:$0xff] }
  0x19   :  { %379 = vmatmul.mubr.msk.f32.vlgmr.msra.gmra.mrb[0].mxu0 %vm95_vm1, %v25_v5  ;;  %389 = vmatprep.subr.bf16.mxu1 %v388_v14  ;;  %v396_v26 = vpack.c.bf16 %v43_v24, %v41_v23  ;;  %v45_v29 = vld [vmem:[#allocation2 + $0xa8] sm:$0xff]  ;;  %v47_v30 = vld [vmem:[#allocation2 + $0xb8] sm:$0xff]  ;;  %v398_v31 = vpack.c.bf16 %v42_v28, %v40_v27  ;;  %v44_v33 = vld [vmem:[#allocation2 + $0xa0] sm:$0xff] }
  0x1a   :  { %v400_v32 = vpack.c.bf16 %v47_v30, %v45_v29  ;;  %v46_v34 = vld [vmem:[#allocation2 + $0xb0] sm:$0xff]  ;;  %v49_v36 = vld [vmem:[#allocation2 + $0xc8] sm:$0xff]  ;;  %v51_v37 = vld [vmem:[#allocation2 + $0xd8] sm:$0xff] }
  0x1b   :  { %v402_v35 = vpack.c.bf16 %v46_v34, %v44_v33  ;;  %v404_v38 = vpack.c.bf16 %v51_v37, %v49_v36  ;;  %v48_v39 = vld [vmem:[#allocation2 + $0xc0] sm:$0xff]  ;;  %v50_v40 = vld [vmem:[#allocation2 + $0xd0] sm:$0xff]  ;;  %v53_v42 = vld [vmem:[#allocation2 + $0xe8] sm:$0xff] }
  0x1c   :  { %391 = vmatpush1.bf16.msra.mxu1 %v390_v19  ;;  %v406_v41 = vpack.c.bf16 %v50_v40, %v48_v39  ;;  %v55_v43 = vld [vmem:[#allocation2 + $0xf8] sm:$0xff]  ;;  %v52_v44 = vld [vmem:[#allocation2 + $0xe0] sm:$0xff]  ;;  %v54_v46 = vld [vmem:[#allocation2 + $0xf0] sm:$0xff] }
  0x1d   :  { %393 = vmatprep.subr.bf16.mxu1 %v392_v20  ;;  %v408_v45 = vpack.c.bf16 %v55_v43, %v53_v42  ;;  %v57_v47 = vld [vmem:[#allocation2 + $0x108] sm:$0xff]  ;;  %v59_v48 = vld [vmem:[#allocation2 + $0x118] sm:$0xff]  ;;  %v410_v49 = vpack.c.bf16 %v54_v46, %v52_v44  ;;  %v56_v51 = vld [vmem:[#allocation2 + $0x100] sm:$0xff] }
  0x1e   :  { %v412_v50 = vpack.c.bf16 %v59_v48, %v57_v47  ;;  %v58_v52 = vld [vmem:[#allocation2 + $0x110] sm:$0xff]  ;;  %v76_v54 = vld [vmem:[#allocation2 + $0x220] sm:$0xff] }
  0x1f   :  { %v414_v53 = vpack.c.bf16 %v58_v52, %v56_v51  ;;  %v77_v55 = vld [vmem:[#allocation2 + $0x230] sm:$0xff]  ;;  %v60_v56 = vld [vmem:[#allocation2 + $0x120] sm:$0xff] }
  0x20   :  { %395 = vmatpush1.bf16.msra.mxu1 %v394_v25  ;;  %v416_v57 = vpack.c.bf16 %v77_v55, %v76_v54  ;;  %v61_v58 = vld [vmem:[#allocation2 + $0x130] sm:$0xff]  ;;  %v78_v59 = vld [vmem:[#allocation2 + $0x240] sm:$0xff] }
  0x21   :  { %397 = vmatprep.subr.bf16.mxu1 %v396_v26  ;;  %v79_v60 = vld [vmem:[#allocation2 + $0x250] sm:$0xff]  ;;  %v418_v61 = vpack.c.bf16 %v61_v58, %v60_v56  ;;  %v62_v63 = vld [vmem:[#allocation2 + $0x140] sm:$0xff] }
  0x22   :  { %v420_v62 = vpack.c.bf16 %v79_v60, %v78_v59  ;;  %v63_v0 = vld [vmem:[#allocation2 + $0x150] sm:$0xff]  ;;  %v80_v1 = vld [vmem:[#allocation2 + $0x260] sm:$0xff]  ;;  %417 = vmatprep.subr.bf16.mxu0 %v416_v57 }
  0x23   :  { %v81_v2 = vld [vmem:[#allocation2 + $0x270] sm:$0xff]  ;;  %419 = vmatpush3.bf16.msra.mxu0 %v418_v61  ;;  %v422_v3 = vpack.c.bf16 %v63_v0, %v62_v63  ;;  %v64_v5 = vld [vmem:[#allocation2 + $0x160] sm:$0xff] }
  0x24   :  { %399 = vmatpush1.bf16.msra.mxu1 %v398_v31  ;;  %421 = vmatprep.subr.bf16.mxu0 %v420_v62  ;;  %v424_v4 = vpack.c.bf16 %v81_v2, %v80_v1  ;;  %v65_v6 = vld [vmem:[#allocation2 + $0x170] sm:$0xff]  ;;  %v82_v7 = vld [vmem:[#allocation2 + $0x280] sm:$0xff] }
  0x25   :  { %401 = vmatprep.subr.bf16.mxu1 %v400_v32  ;;  %v83_v8 = vld [vmem:[#allocation2 + $0x290] sm:$0xff]  ;;  %v426_v9 = vpack.c.bf16 %v65_v6, %v64_v5  ;;  %v66_v11 = vld [vmem:[#allocation2 + $0x180] sm:$0xff] }
  0x26   :  { %v428_v10 = vpack.c.bf16 %v83_v8, %v82_v7  ;;  %v67_v12 = vld [vmem:[#allocation2 + $0x190] sm:$0xff]  ;;  %v84_v17 = vld [vmem:[#allocation2 + $0x2a0] sm:$0xff] }
  0x27   :  { %423 = vmatpush3.bf16.msra.mxu0 %v422_v3  ;;  %v430_v13 = vpack.c.bf16 %v67_v12, %v66_v11  ;;  %v85_v18 = vld [vmem:[#allocation2 + $0x2b0] sm:$0xff]  ;;  %v68_v20 = vld [vmem:[#allocation2 + $0x1a0] sm:$0xff] }
  0x28   :  { %403 = vmatpush1.bf16.msra.mxu1 %v402_v35  ;;  %425 = vmatprep.subr.bf16.mxu0 %v424_v4  ;;  %v432_v19 = vpack.c.bf16 %v85_v18, %v84_v17  ;;  %v69_v21 = vld [vmem:[#allocation2 + $0x1b0] sm:$0xff]  ;;  %v86_v23 = vld [vmem:[#allocation2 + $0x2c0] sm:$0xff] }
  0x29   :  { %405 = vmatprep.subr.bf16.mxu1 %v404_v38  ;;  %v434_v22 = vpack.c.bf16 %v69_v21, %v68_v20  ;;  %v87_v24 = vld [vmem:[#allocation2 + $0x2d0] sm:$0xff]  ;;  %v70_v26 = vld [vmem:[#allocation2 + $0x1c0] sm:$0xff] }
  0x2a   :  { %v436_v25 = vpack.c.bf16 %v87_v24, %v86_v23  ;;  %v71_v27 = vld [vmem:[#allocation2 + $0x1d0] sm:$0xff]  ;;  %v88_v29 = vld [vmem:[#allocation2 + $0x2e0] sm:$0xff] }
  0x2b   :  { %427 = vmatpush3.bf16.msra.mxu0 %v426_v9  ;;  %v438_v28 = vpack.c.bf16 %v71_v27, %v70_v26  ;;  %v89_v30 = vld [vmem:[#allocation2 + $0x2f0] sm:$0xff]  ;;  %v72_v31 = vld [vmem:[#allocation2 + $0x1e0] sm:$0xff] }
  0x2c   :  { %407 = vmatpush1.bf16.msra.mxu1 %v406_v41  ;;  %429 = vmatprep.subr.bf16.mxu0 %v428_v10  ;;  %v440_v32 = vpack.c.bf16 %v89_v30, %v88_v29  ;;  %v73_v33 = vld [vmem:[#allocation2 + $0x1f0] sm:$0xff]  ;;  %v90_v34 = vld [vmem:[#allocation2 + $0x300] sm:$0xff]  ;;  %v171_v41 = vlaneseq }
  0x2d   :  { %409 = vmatprep.subr.bf16.mxu1 %v408_v45  ;;  %v91_v35 = vld [vmem:[#allocation2 + $0x310] sm:$0xff]  ;;  %v442_v36 = vpack.c.bf16 %v73_v33, %v72_v31  ;;  %v74_v38 = vld [vmem:[#allocation2 + $0x200] sm:$0xff] }
  0x2e   :  { %v444_v37 = vpack.c.bf16 %v91_v35, %v90_v34  ;;  %v75_v39 = vld [vmem:[#allocation2 + $0x210] sm:$0xff]  ;;  %v172_v42 = vshrl.u32 %v171_v41, 7  ;;  %v93_v44 = vld [vmem:[#allocation2 + $0x320] ss:$8 sm:$0x3]  ;;  %v325_v59 = vand.u32 127, %v171_v41 }
  0x2f   :  { %431 = vmatpush3.bf16.msra.mxu0 %v430_v13  ;;  %v446_v40 = vpack.c.bf16 %v75_v39, %v74_v38  ;;  %v94_v55 = vld [vmem:[#allocation2 + $0x330] ss:$0 sm:$0xff] }
  0x30   :  { %411 = vmatpush1.bf16.msra.mxu1 %v410_v49  ;;  %433 = vmatprep.subr.bf16.mxu0 %v432_v19  ;;  %v173_v43 = vsub.s32 0, %v172_v42  ;;  %v177_v45 = vsub.s32 1, %v172_v42  ;;  %vm326_vm2 = vcmp.lt.s32.totalorder %v325_v59, 1 }
  0x31   :  { %413 = vmatprep.subr.bf16.mxu1 %v412_v50 }
  0x32   :  { %v174_v46 = vrot.slane %v93_v44, %v173_v43  ;;  %v178_v47 = vrot.slane %v93_v44, %v177_v45 }
  0x33   :  { %435 = vmatpush3.bf16.msra.mxu0 %v434_v22 }
  0x34   :  { %415 = vmatpush1.bf16.msra.mxu1 %v414_v53  ;;  %437 = vmatprep.subr.bf16.mxu0 %v436_v25 }
  0x37   :  { %439 = vmatpush3.bf16.msra.mxu0 %v438_v28 }
  0x38   :  { %441 = vmatprep.subr.bf16.mxu0 %v440_v32 }
  0x3b   :  { %443 = vmatpush3.bf16.msra.mxu0 %v442_v36 }
  0x3c   :  { %445 = vmatprep.subr.bf16.mxu0 %v444_v37 }
  0x3f   :  { %447 = vmatpush3.bf16.msra.mxu0 %v446_v40 }
  0xec   :  { %v165_v14 = vpop.f32.mrb[0].mxu0 }
  0xed   :  { %454 = vtanh.f32 %v165_v14  ;;  %v380_v15 = vpop.f32.mrb[1].mxu0 }
  0xf7   :  { %v455_v16 = vpop.eup %454 }
  0xf8   :  { %246 = vmatmul.mubr.f32.vlgmr.msra.gmra.mrb[0].mxu1 %v455_v16 }
 0x1cb   :  { %v247_v48 = vpop.f32.mrb[0].mxu1 }
 0x1cc   :  { %v248_v49 = vadd.f32 %v247_v48, %v174_v46  ;;  %v249_v50 = vpop.f32.mrb[1].mxu1 }
 0x1cd   :  { %v250_v51 = vadd.f32 %v249_v50, %v178_v47 }
 0x1cf   :  { %456 = vtanh.f32 %v250_v51 }
 0x1d0   :  { %458 = vtanh.f32 %v248_v49 }
 0x1d9   :  { %v457_v52 = vpop.eup %456 }
 0x1da   :  { %v459_v53 = vpop.eup %458  ;;  %318 = vmatprep.mubr.f32.mxu0 %v457_v52 }
 0x1db   :  { %319 = vmatmul.mubr.f32.vlgmr.msra.gmra.mrb[2].mxu0 %v459_v53 }
 0x2ae   :  { %v371_v54 = vpop.f32.mrb[2].mxu0 }
 0x2af   :  { %v372_v56 = vpop.f32.mrb[3].mxu0 }
 0x2b0   :  { %v373_v57 = vadd.f32 %v372_v56, %v371_v54 }
 0x2b2   :  { %v321_v58 = vadd.f32 %v373_v57, %v94_v55 }
 0x2b4   :  { %460 = vtanh.f32 %v321_v58 }
 0x2be   :  { %v461_v60 = vpop.eup %460 }
 0x2bf   :  { %v328_v61 = vsel %vm326_vm2, %v461_v60, %v321_v58 }
 0x2c0   :  { %329 = vst [vmem:[%s527_s2] sm:$0xff] %v328_v61 }
 0x2c1   :  { %334 = vsyncpa [#allocation3], 1 }

</bundles_post_ra>
